<compile_context>
chip_gen: v6e
topology: v6e:2x2x1
jax: 0.10.0
libtpu: 0.0.40
codegen_flags: <defaults>
</compile_context>

<pallas_src>
import functools
import math

import numpy as np
import jax
import jax.numpy as jnp
from jax.experimental import pallas as pl
from jax.experimental.pallas import tpu as pltpu


# ---------------------------------------------------------------------------
# Mask construction (mirrors MaskedLinear_border / MaskedLinear_nonsquare)
# ---------------------------------------------------------------------------
def build_mask_border(Q, n, m, exclusive):
    mQ, nQ, dQ = m // Q, n // Q, (n - m) // Q
    base = np.ones((mQ, mQ), dtype=np.float32)
    base = (1.0 - np.triu(base)) if exclusive else np.tril(base)
    blk = np.concatenate([np.zeros((dQ, mQ), np.float32), base], axis=0)   # (nQ, mQ)
    blk = np.concatenate([np.ones((nQ, dQ), np.float32), blk], axis=1)     # (nQ, nQ)
    return np.kron(blk, np.ones((Q, Q), np.float32)).astype(np.float32)    # (n, n)


def build_mask_nonsquare(Q, n, m):
    mQ, nQ, dQ = m // Q, n // Q, (n - m) // Q
    base = np.tril(np.ones((mQ, mQ), np.float32))
    blk = np.concatenate([np.ones((mQ, dQ), np.float32), base], axis=1)    # (mQ, nQ)
    return np.kron(blk, np.ones((Q, Q), np.float32)).astype(np.float32)    # (m, n)


def _round_up(a, b):
    return ((a + b - 1) // b) * b


# ---------------------------------------------------------------------------
# Pallas kernel: masked-linear -> PReLU -> masked-linear -> group softmax
# ---------------------------------------------------------------------------
def made_i_kernel(m_valid, mm_dtype,
                  border_ref, x_ref, w1b_ref, w1x_ref, b1_ref, a_ref,
                  w2_ref, b2_ref, g_ref, o_ref):
    # MaskedLinear_border (mask folded into w1t; split weight avoids HBM concat)
    h = jnp.dot(border_ref[...], w1b_ref[...], preferred_element_type=jnp.float32)
    h = h + jnp.dot(x_ref[...], w1x_ref[...], preferred_element_type=jnp.float32)
    h = h + b1_ref[...]                                          # (TB, n_pad) f32

    # PReLU with per-feature slope (f32)
    h = jnp.where(h > 0, h, a_ref[...] * h)

    # MaskedLinear_nonsquare
    y = jnp.dot(h.astype(mm_dtype), w2_ref[...],
                preferred_element_type=jnp.float32) + b2_ref[...]  # (TB, m_pad) f32

    # Group softmax, fully vectorized and lane-dense.
    m_pad = y.shape[-1]
    lane = jax.lax.broadcasted_iota(jnp.int32, (1, m_pad), 1)
    valid = lane < m_valid                                       # real (unpadded) lanes
    # Softmax within a group is invariant to subtracting any per-row constant; use the
    # per-row max over valid lanes for stability (one XLU reduce over the full vreg).
    row_max = jnp.max(jnp.where(valid, y, jnp.float32(-1e30)), axis=-1, keepdims=True)
    e = jnp.where(valid, jnp.exp(y - row_max), jnp.float32(1.0))
    # Per-lane group sum via one (m_pad, m_pad) same-group indicator matmul on the MXU
    # (the sum is already broadcast back to every lane of its group).
    gsum = jnp.dot(e, g_ref[...], preferred_element_type=jnp.float32)
    # Exact reciprocal (approx=True is faster on EUP but only ~1e-3 accurate).
    o_ref[...] = e * pl.reciprocal(gsum, approx=False)           # one full-width store


# ---------------------------------------------------------------------------
# Parameter construction
# ---------------------------------------------------------------------------
def init_params(key, Q, l, bias=True, matmul_dtype=jnp.bfloat16):
    m = Q * (2 * l - 1)
    n = Q * (m // Q + 4 * l)
    d = n - m
    mask1 = build_mask_border(Q, n, m, exclusive=True)       # (n, n)  out x in
    mask2 = build_mask_nonsquare(Q, n, m)                     # (m, n)  out x in

    k1, k2, k3, k4 = jax.random.split(key, 4)
    bnd = 1.0 / np.sqrt(n)
    w1 = jax.random.uniform(k1, (n, n), jnp.float32, -bnd, bnd)
    b1 = (jax.random.uniform(k2, (1, n), jnp.float32, -bnd, bnd) if bias
          else jnp.zeros((1, n), jnp.float32))
    w2 = jax.random.uniform(k3, (m, n), jnp.float32, -bnd, bnd)
    b2 = (jax.random.uniform(k4, (1, m), jnp.float32, -bnd, bnd) if bias
          else jnp.zeros((1, m), jnp.float32))

    # mimic __init__: weight *= mask; weight *= sqrt(mask.numel()/mask.sum())
    w1_eff = (w1 * mask1) * np.float32(np.sqrt(mask1.size / mask1.sum()))
    w2_eff = (w2 * mask2) * np.float32(np.sqrt(mask2.size / mask2.sum()))
    alpha = jnp.full((1, n), 0.5, jnp.float32)                # PReLU(init=0.5)

    w1t = jnp.transpose(w1_eff)   # (n, n): h = [border|x] @ w1t + b1
    w2t = jnp.transpose(w2_eff)   # (n, m): y = h @ w2t + b2

    # raw f32 params = exact torch-module semantics (for the f32 reference)
    raw = dict(w1t=w1t, b1=b1, alpha=alpha, w2t=w2t, b2=b2)

    # lane-padded + bf16 parameters for the kernel (padding done once, at init)
    n_pad = _round_up(n, 128)                                       # hidden width
    m_pad = _round_up(m, (Q * 128) // math.gcd(Q, 128))             # mult of 128 and Q

    def pad2(a, rows, cols):
        return jnp.pad(a, ((0, rows - a.shape[0]), (0, cols - a.shape[1])))

    kparams = dict(
        w1b=pad2(w1t[:d], d, n_pad).astype(matmul_dtype),      # (d, n_pad)
        w1x=pad2(w1t[d:], m, n_pad).astype(matmul_dtype),      # (m, n_pad)
        b1=pad2(b1, 1, n_pad),                                 # (1, n_pad) f32
        alpha=pad2(alpha, 1, n_pad),                           # (1, n_pad) f32
        w2t=pad2(w2t, n_pad, m_pad).astype(matmul_dtype),      # (n_pad, m_pad)
        b2=pad2(b2, 1, m_pad),                                 # (1, m_pad) f32
        # same-group indicator: gmat[i, j] = 1 iff i // Q == j // Q
        gmat=jnp.asarray(np.kron(np.eye(m_pad // Q, dtype=np.float32),
                                 np.ones((Q, Q), np.float32))),  # (m_pad, m_pad) f32
    )
    meta = dict(Q=Q, l=l, n=n, m=m, d=d, n_pad=n_pad, m_pad=m_pad)
    return kparams, raw, meta


# ---------------------------------------------------------------------------
# Forward wrapper
# ---------------------------------------------------------------------------
def made_i_forward(kparams, meta, x, border, tile_b=512):
    """MADE_i.forward(x, border, Q) -> (B, 1, m/Q, Q) softmax probabilities."""
    Q, m, d, n_pad, m_pad = meta["Q"], meta["m"], meta["d"], meta["n_pad"], meta["m_pad"]
    B = x.shape[0]
    mm_dtype = kparams["w2t"].dtype

    x2 = x.reshape(B, -1).astype(mm_dtype)          # (B, m) sample part (bf16)
    bo = border.reshape(B, -1).astype(mm_dtype)     # (B, d) border part (bf16)

    # Batch tile: multiple of 8 sublanes (or == B).  At tile_b=512 the double-buffered
    # activations + resident weights use ~1 MiB, well under the 32 MiB scoped-VMEM
    # limit on all of v5e / v6e / v7x (v7x has only 64 MiB physical VMEM).
    tb = B if B <= tile_b else tile_b
    grid = (pl.cdiv(B, tb),)

    res = lambda i: (0, 0)     # weights / biases: VMEM-resident across the grid
    row = lambda i: (i, 0)     # activations / output: streamed batch tiles

    out = pl.pallas_call(
        functools.partial(made_i_kernel, m, mm_dtype),
        out_shape=jax.ShapeDtypeStruct((B, m_pad), jnp.float32),
        grid=grid,
        in_specs=[
            pl.BlockSpec((tb, d), row),             # border
            pl.BlockSpec((tb, m), row),             # x
            pl.BlockSpec((d, n_pad), res),          # w1t[:d]  (border rows)
            pl.BlockSpec((m, n_pad), res),          # w1t[d:]  (sample rows)
            pl.BlockSpec((1, n_pad), res),          # b1
            pl.BlockSpec((1, n_pad), res),          # alpha
            pl.BlockSpec((n_pad, m_pad), res),      # w2t
            pl.BlockSpec((1, m_pad), res),          # b2
            pl.BlockSpec((m_pad, m_pad), res),      # same-group indicator
        ],
        out_specs=pl.BlockSpec((tb, m_pad), row),   # lane-dense output store
        compiler_params=pltpu.CompilerParams(
            dimension_semantics=("parallel",),      # megacore split on v7x
            vmem_limit_bytes=32 * 1024 * 1024,
        ),
    )(bo, x2, kparams["w1b"], kparams["w1x"], kparams["b1"], kparams["alpha"],
      kparams["w2t"], kparams["b2"], kparams["gmat"])

    return out[:, :m].reshape(B, 1, m // Q, Q)


# ---------------------------------------------------------------------------
# References
# ---------------------------------------------------------------------------
def made_i_reference_matched(kparams, meta, x, border):
    """Pure-JAX reference using the same bf16 matmul operands as the kernel."""
    Q, m = meta["Q"], meta["m"]
    B = x.shape[0]
    mm_dtype = kparams["w2t"].dtype
    x2 = x.reshape(B, -1).astype(mm_dtype)
    bo = border.reshape(B, -1).astype(mm_dtype)
    h = (jnp.dot(bo, kparams["w1b"], preferred_element_type=jnp.float32)
         + jnp.dot(x2, kparams["w1x"], preferred_element_type=jnp.float32)
         + kparams["b1"])
    h = jnp.where(h > 0, h, kparams["alpha"] * h)
    y = (jnp.dot(h.astype(mm_dtype), kparams["w2t"],
                 preferred_element_type=jnp.float32) + kparams["b2"])[:, :m]
    return jax.nn.softmax(y.reshape(B, 1, m // Q, Q), axis=3)


def made_i_reference_f32(raw, meta, x, border):
    """f32 reference following the torch module exactly (concat + dense weights)."""
    Q, m = meta["Q"], meta["m"]
    B = x.shape[0]
    x_in = jnp.concatenate([border.reshape(B, -1), x.reshape(B, -1)], axis=1)
    h = x_in @ raw["w1t"] + raw["b1"]
    h = jnp.where(h > 0, h, raw["alpha"] * h)
    y = h @ raw["w2t"] + raw["b2"]
    return jax.nn.softmax(y.reshape(B, 1, m // Q, Q), axis=3)


if __name__ == "__main__":
    Q, l = 2, 2
    key = jax.random.PRNGKey(0)
    kp, kx, kb, kx2, kb2 = jax.random.split(key, 5)

    kparams, raw, meta = init_params(kp, Q, l, bias=True)     # m=6, n=22, d=16
    m, d = meta["m"], meta["d"]

    # --- small single-tile case (B=2, grid=1) ---
    B = 2
    x = jax.random.uniform(kx, (B, 1, m), jnp.float32)
    border = jax.random.uniform(kb, (B, 1, d), jnp.float32)
    out = jax.block_until_ready(made_i_forward(kparams, meta, x, border))
    assert out.shape == (B, 1, m // Q, Q)
    ref = made_i_reference_matched(kparams, meta, x, border)
    np.testing.assert_allclose(np.asarray(out), np.asarray(ref), rtol=1e-4, atol=1e-5)
    ref32 = made_i_reference_f32(raw, meta, x, border)
    np.testing.assert_allclose(np.asarray(out), np.asarray(ref32), rtol=5e-2, atol=3e-2)

    # --- multi-tile case exercising the batch grid (B=48, tile_b=16 -> grid=3) ---
    B2 = 48
    x2 = jax.random.uniform(kx2, (B2, 1, m), jnp.float32)
    border2 = jax.random.uniform(kb2, (B2, 1, d), jnp.float32)
    out2 = jax.block_until_ready(made_i_forward(kparams, meta, x2, border2, tile_b=16))
    ref2 = made_i_reference_matched(kparams, meta, x2, border2)
    np.testing.assert_allclose(np.asarray(out2), np.asarray(ref2), rtol=1e-4, atol=1e-5)

    print("KERNEL_OK")
</pallas_src>

<mosaic_0001>
module attributes {stable_mosaic.version = 11 : i64} {
  func.func @made_i_kernel(%arg0: i32, %arg1: memref<2x16xbf16, #tpu.memory_space<vmem>>, %arg2: memref<2x6xbf16, #tpu.memory_space<vmem>>, %arg3: memref<16x128xbf16, #tpu.memory_space<vmem>>, %arg4: memref<6x128xbf16, #tpu.memory_space<vmem>>, %arg5: memref<1x128xf32, #tpu.memory_space<vmem>>, %arg6: memref<1x128xf32, #tpu.memory_space<vmem>>, %arg7: memref<128x128xbf16, #tpu.memory_space<vmem>>, %arg8: memref<1x128xf32, #tpu.memory_space<vmem>>, %arg9: memref<128x128xf32, #tpu.memory_space<vmem>>, %arg10: memref<2x128xf32, #tpu.memory_space<vmem>>) attributes {dimension_semantics = [#tpu.dimension_semantics<parallel>], iteration_bounds = array<i64: 1>, scalar_prefetch = 0 : i64, scratch_operands = 0 : i64, tpu.core_type = #tpu.core_type<tc>, window_params = [{transform_indices = @transform_0, window_bounds = array<i64: 2, 16>}, {transform_indices = @transform_1, window_bounds = array<i64: 2, 6>}, {pipeline_mode = #tpu.pipeline_mode<synchronous>, transform_indices = @transform_2, window_bounds = array<i64: 16, 128>}, {pipeline_mode = #tpu.pipeline_mode<synchronous>, transform_indices = @transform_3, window_bounds = array<i64: 6, 128>}, {pipeline_mode = #tpu.pipeline_mode<synchronous>, transform_indices = @transform_4, window_bounds = array<i64: 1, 128>}, {pipeline_mode = #tpu.pipeline_mode<synchronous>, transform_indices = @transform_5, window_bounds = array<i64: 1, 128>}, {pipeline_mode = #tpu.pipeline_mode<synchronous>, transform_indices = @transform_6, window_bounds = array<i64: 128, 128>}, {pipeline_mode = #tpu.pipeline_mode<synchronous>, transform_indices = @transform_7, window_bounds = array<i64: 1, 128>}, {pipeline_mode = #tpu.pipeline_mode<synchronous>, transform_indices = @transform_8, window_bounds = array<i64: 128, 128>}, {transform_indices = @transform_9, window_bounds = array<i64: 2, 128>}]} {
    %c0 = arith.constant 0 : index
    %c0_0 = arith.constant 0 : index
    %0 = vector.load %arg1[%c0, %c0_0] : memref<2x16xbf16, #tpu.memory_space<vmem>>, vector<2x16xbf16>
    %c0_1 = arith.constant 0 : index
    %c0_2 = arith.constant 0 : index
    %1 = vector.load %arg3[%c0_1, %c0_2] : memref<16x128xbf16, #tpu.memory_space<vmem>>, vector<16x128xbf16>
    %cst = arith.constant dense<0.000000e+00> : vector<2x128xf32>
    %2 = tpu.matmul %0, %1, %cst {dimension_numbers = #tpu.dot_dimension_numbers<[1], [0], [0], [1], [0, 0, 1, 1], [], []>} : vector<2x16xbf16>, vector<16x128xbf16>, vector<2x128xf32> -> vector<2x128xf32>
    %c0_3 = arith.constant 0 : index
    %c0_4 = arith.constant 0 : index
    %3 = vector.load %arg2[%c0_3, %c0_4] : memref<2x6xbf16, #tpu.memory_space<vmem>>, vector<2x6xbf16>
    %c0_5 = arith.constant 0 : index
    %c0_6 = arith.constant 0 : index
    %4 = vector.load %arg4[%c0_5, %c0_6] : memref<6x128xbf16, #tpu.memory_space<vmem>>, vector<6x128xbf16>
    %cst_7 = arith.constant dense<0.000000e+00> : vector<2x128xf32>
    %5 = tpu.matmul %3, %4, %cst_7 {dimension_numbers = #tpu.dot_dimension_numbers<[1], [0], [0], [1], [0, 0, 1, 1], [], []>} : vector<2x6xbf16>, vector<6x128xbf16>, vector<2x128xf32> -> vector<2x128xf32>
    %6 = arith.addf %2, %5 : vector<2x128xf32>
    %c0_8 = arith.constant 0 : index
    %c0_9 = arith.constant 0 : index
    %7 = vector.load %arg5[%c0_8, %c0_9] : memref<1x128xf32, #tpu.memory_space<vmem>>, vector<1x128xf32>
    %8 = vector.broadcast %7 : vector<1x128xf32> to vector<2x128xf32>
    %9 = arith.addf %6, %8 : vector<2x128xf32>
    %cst_10 = arith.constant 0.000000e+00 : f32
    %10 = vector.broadcast %cst_10 : f32 to vector<2x128xf32>
    %11 = arith.cmpf ogt, %9, %10 : vector<2x128xf32>
    %c0_11 = arith.constant 0 : index
    %c0_12 = arith.constant 0 : index
    %12 = vector.load %arg6[%c0_11, %c0_12] : memref<1x128xf32, #tpu.memory_space<vmem>>, vector<1x128xf32>
    %13 = vector.broadcast %12 : vector<1x128xf32> to vector<2x128xf32>
    %14 = arith.mulf %13, %9 : vector<2x128xf32>
    %15 = arith.select %11, %9, %14 : vector<2x128xi1>, vector<2x128xf32>
    %16 = arith.truncf %15 : vector<2x128xf32> to vector<2x128xbf16>
    %c0_13 = arith.constant 0 : index
    %c0_14 = arith.constant 0 : index
    %17 = vector.load %arg7[%c0_13, %c0_14] : memref<128x128xbf16, #tpu.memory_space<vmem>>, vector<128x128xbf16>
    %cst_15 = arith.constant dense<0.000000e+00> : vector<2x128xf32>
    %18 = tpu.matmul %16, %17, %cst_15 {dimension_numbers = #tpu.dot_dimension_numbers<[1], [0], [0], [1], [0, 0, 1, 1], [], []>} : vector<2x128xbf16>, vector<128x128xbf16>, vector<2x128xf32> -> vector<2x128xf32>
    %c0_16 = arith.constant 0 : index
    %c0_17 = arith.constant 0 : index
    %19 = vector.load %arg8[%c0_16, %c0_17] : memref<1x128xf32, #tpu.memory_space<vmem>>, vector<1x128xf32>
    %20 = vector.broadcast %19 : vector<1x128xf32> to vector<2x128xf32>
    %21 = arith.addf %18, %20 : vector<2x128xf32>
    %22 = tpu.iota {dimensions = array<i32: 1>} : vector<1x128xi32>
    %c6_i32 = arith.constant 6 : i32
    %23 = vector.broadcast %c6_i32 : i32 to vector<1x128xi32>
    %24 = arith.cmpi slt, %22, %23 : vector<1x128xi32>
    %cst_18 = arith.constant -1.000000e+30 : f32
    %25 = vector.shape_cast %24 : vector<1x128xi1> to vector<1x128xi1>
    %26 = vector.broadcast %25 : vector<1x128xi1> to vector<2x128xi1>
    %27 = vector.broadcast %cst_18 : f32 to vector<2x128xf32>
    %28 = arith.select %26, %21, %27 : vector<2x128xi1>, vector<2x128xf32>
    %cst_19 = arith.constant dense<0xFF800000> : vector<2xf32>
    %29 = vector.multi_reduction <maximumf>, %28, %cst_19 [1] : vector<2x128xf32> to vector<2xf32>
    %30 = vector.shape_cast %29 : vector<2xf32> to vector<2x1xf32>
    %31 = vector.broadcast %30 : vector<2x1xf32> to vector<2x128xf32>
    %32 = arith.subf %21, %31 : vector<2x128xf32>
    %33 = math.exp %32 : vector<2x128xf32>
    %cst_20 = arith.constant 1.000000e+00 : f32
    %34 = vector.shape_cast %24 : vector<1x128xi1> to vector<1x128xi1>
    %35 = vector.broadcast %34 : vector<1x128xi1> to vector<2x128xi1>
    %36 = vector.broadcast %cst_20 : f32 to vector<2x128xf32>
    %37 = arith.select %35, %33, %36 : vector<2x128xi1>, vector<2x128xf32>
    %c0_21 = arith.constant 0 : index
    %c0_22 = arith.constant 0 : index
    %38 = vector.load %arg9[%c0_21, %c0_22] : memref<128x128xf32, #tpu.memory_space<vmem>>, vector<128x128xf32>
    %cst_23 = arith.constant dense<0.000000e+00> : vector<2x128xf32>
    %39 = tpu.matmul %37, %38, %cst_23 {dimension_numbers = #tpu.dot_dimension_numbers<[1], [0], [0], [1], [0, 0, 1, 1], [], []>} : vector<2x128xf32>, vector<128x128xf32>, vector<2x128xf32> -> vector<2x128xf32>
    %40 = tpu.reciprocal %39 : vector<2x128xf32> -> vector<2x128xf32>
    %41 = arith.mulf %37, %40 : vector<2x128xf32>
    %c0_24 = arith.constant 0 : index
    %c0_25 = arith.constant 0 : index
    %42 = vector.load %arg10[%c0_24, %c0_25] : memref<2x128xf32, #tpu.memory_space<vmem>>, vector<2x128xf32>
    tpu.vector_store %arg10[%c0_24, %c0_25], %41 {strides = array<i32>} : memref<2x128xf32, #tpu.memory_space<vmem>>, vector<2x128xf32>,
    return
  }
  func.func @transform_0(%arg0: i32) -> (i32, i32) {
    %c0_i32 = arith.constant 0 : i32
    %c0_i32_0 = arith.constant 0 : i32
    return %arg0, %c0_i32 : i32, i32
  }
  func.func @transform_1(%arg0: i32) -> (i32, i32) {
    %c0_i32 = arith.constant 0 : i32
    %c0_i32_0 = arith.constant 0 : i32
    return %arg0, %c0_i32 : i32, i32
  }
  func.func @transform_2(%arg0: i32) -> (i32, i32) {
    %c0_i32 = arith.constant 0 : i32
    %c0_i32_0 = arith.constant 0 : i32
    %c0_i32_1 = arith.constant 0 : i32
    return %c0_i32, %c0_i32_0 : i32, i32
  }
  func.func @transform_3(%arg0: i32) -> (i32, i32) {
    %c0_i32 = arith.constant 0 : i32
    %c0_i32_0 = arith.constant 0 : i32
    %c0_i32_1 = arith.constant 0 : i32
    return %c0_i32, %c0_i32_0 : i32, i32
  }
  func.func @transform_4(%arg0: i32) -> (i32, i32) {
    %c0_i32 = arith.constant 0 : i32
    %c0_i32_0 = arith.constant 0 : i32
    %c0_i32_1 = arith.constant 0 : i32
    return %c0_i32, %c0_i32_0 : i32, i32
  }
  func.func @transform_5(%arg0: i32) -> (i32, i32) {
    %c0_i32 = arith.constant 0 : i32
    %c0_i32_0 = arith.constant 0 : i32
    %c0_i32_1 = arith.constant 0 : i32
    return %c0_i32, %c0_i32_0 : i32, i32
  }
  func.func @transform_6(%arg0: i32) -> (i32, i32) {
    %c0_i32 = arith.constant 0 : i32
    %c0_i32_0 = arith.constant 0 : i32
    %c0_i32_1 = arith.constant 0 : i32
    return %c0_i32, %c0_i32_0 : i32, i32
  }
  func.func @transform_7(%arg0: i32) -> (i32, i32) {
    %c0_i32 = arith.constant 0 : i32
    %c0_i32_0 = arith.constant 0 : i32
    %c0_i32_1 = arith.constant 0 : i32
    return %c0_i32, %c0_i32_0 : i32, i32
  }
  func.func @transform_8(%arg0: i32) -> (i32, i32) {
    %c0_i32 = arith.constant 0 : i32
    %c0_i32_0 = arith.constant 0 : i32
    %c0_i32_1 = arith.constant 0 : i32
    return %c0_i32, %c0_i32_0 : i32, i32
  }
  func.func @transform_9(%arg0: i32) -> (i32, i32) {
    %c0_i32 = arith.constant 0 : i32
    %c0_i32_0 = arith.constant 0 : i32
    return %arg0, %c0_i32 : i32, i32
  }
}

</mosaic_0001>

<bundles_post_ra>
// kernel: tpu_custom_call.1
= control target key start
LH: loop header
LB: loop body
LE: loop exit
PB: predicated region body
PF: predicated region fallthrough
CT: control target
= control target key end

     0   :  { %14 = vsyncpa [#allocation3], 0  ;;  %s810_s0 = inlined_call_operand.hbm [shape: bf16[2,16], index: 0, kind: input, shape index: {}]   ;;  %s811_s1 = inlined_call_operand.vmem [shape: bf16[2,6], index: 1, kind: input, shape index: {}]   ;;  %s812_s2 = inlined_call_operand.hbm [shape: bf16[16,128], index: 2, kind: input, shape index: {}]   ;;  %s813_s3 = inlined_call_operand.vmem [shape: bf16[6,128], index: 3, kind: input, shape index: {}]   ;;  %s814_s4 = inlined_call_operand.vmem [shape: f32[1,128], index: 4, kind: input, shape index: {}]   ;;  %s815_s5 = inlined_call_operand.vmem [shape: f32[1,128], index: 5, kind: input, shape index: {}]   ;;  %s816_s6 = inlined_call_operand.hbm [shape: bf16[128,128], index: 6, kind: input, shape index: {}]   ;;  %s817_s7 = inlined_call_operand.vmem [shape: f32[1,128], index: 7, kind: input, shape index: {}]   ;;  %s818_s8 = inlined_call_operand.hbm [shape: f32[128,128], index: 8, kind: input, shape index: {}]   ;;  %s819_s9 = inlined_call_operand.hbm [shape: f32[2,128], index: 9, kind: output, shape index: {}]  }
   0x1   :  { %15 = vsyncpa [#allocation6], 0 }
   0x2   :  { %16 = vsyncpa [#allocation9], 0 }
   0x3   :  { %17 = vsyncpa [#allocation4], 0  ;;  %s683_s30 = smov [#allocation5]  }
   0x4   :  { %s35_s10 = sshll.u32 %s683_s30, 4  ;;  %s36_s10 = int_to_ptr.vmem [resolvable:$true] %s35_s10 }
   0x5   :  { %s583_s11 = scalar_lea.vmem %s36_s10, 128  ;;  %p588_p1 = scmp.lt.s32.totalorder %s36_s10, %s36_s10 }
   0x6   :  { %p584_p0 = scmp.ne.s32.totalorder %s36_s10, %s583_s11  ;;  %p589_p2 = scmp.lt.s32.totalorder %s583_s11, %s583_s11 }
   0x8   :  { %p590_p3 = por %p589_p2, %p588_p1 }
   0xa   :  { %p591_p4 = pnand %p590_p3, %p584_p0 }
   0xc   :  { %594 = shalt.err (!%p591_p4)
}
   0xd   :  { %s684_s12 = smov 64   ;;  %s685_s13 = smov 4  }
   0xe   :  { %41 = dma.hbm_to_vmem [thread:$0]  %s812_s2, 128, %s36_s10, [#allocation6], %s684_s12, %s684_s12, %s685_s13  }
   0xf   :  { %s686_s16 = smov [#allocation2]   ;;  %s687_s18 = smov [#allocation7]  }
  0x10   :  { %s24_s17 = sshll.u32 %s686_s16, 4  ;;  %s53_s19 = sshll.u32 %s687_s18, 4  ;;  %s25_s17 = int_to_ptr.vmem [resolvable:$true] %s24_s17  ;;  %s54_s19 = int_to_ptr.vmem [resolvable:$true] %s53_s19 }
  0x11   :  { %s603_s20 = scalar_lea.vmem %s25_s17, 16  ;;  %s607_s21 = scalar_lea.vmem %s25_s17, 32 }
  0x12   :  { %p604_p5 = scmp.ne.s32.totalorder %s25_s17, %s603_s20  ;;  %p608_p6 = scmp.lt.s32.totalorder %s25_s17, %s25_s17 }
  0x13   :  { %p609_p7 = scmp.lt.s32.totalorder %s607_s21, %s603_s20 }
  0x15   :  { %p610_p8 = por %p609_p7, %p608_p6 }
  0x17   :  { %p611_p9 = pnand %p610_p8, %p604_p5 }
  0x19   :  { %614 = shalt.err (!%p611_p9)
}
  0x1a   :  { %27 = dma.hbm_to_vmem [thread:$0]  %s810_s0, 16, %s25_s17, [#allocation3]  }
  0x1b   :  { %s623_s24 = scalar_lea.vmem %s54_s19, 1024  ;;  %p628_p11 = scmp.lt.s32.totalorder %s54_s19, %s54_s19 }
  0x1c   :  { %p624_p10 = scmp.ne.s32.totalorder %s54_s19, %s623_s24  ;;  %p629_p12 = scmp.lt.s32.totalorder %s623_s24, %s623_s24 }
  0x1e   :  { %p630_p13 = por %p629_p12, %p628_p11 }
  0x20   :  { %p631_p0 = pnand %p630_p13, %p624_p10 }
  0x22   :  { %634 = shalt.err (!%p631_p0)
}
  0x23   :  { %59 = dma.hbm_to_vmem [thread:$0]  %s816_s6, 1024, %s54_s19, [#allocation6], %s684_s12, %s684_s12, %s685_s13  }
  0x24   :  { %s688_s26 = smov [#allocation8]  }
  0x25   :  { %s67_s27 = sshll.u32 %s688_s26, 4  ;;  %s68_s27 = int_to_ptr.vmem [resolvable:$true] %s67_s27 }
  0x26   :  { %s643_s28 = scalar_lea.vmem %s68_s27, 2048  ;;  %p648_p2 = scmp.lt.s32.totalorder %s68_s27, %s68_s27 }
  0x27   :  { %p644_p1 = scmp.ne.s32.totalorder %s68_s27, %s643_s28  ;;  %p649_p3 = scmp.lt.s32.totalorder %s643_s28, %s643_s28 }
  0x29   :  { %p650_p4 = por %p649_p3, %p648_p2 }
  0x2b   :  { %p651_p5 = pnand %p650_p4, %p644_p1 }
  0x2d   :  { %654 = shalt.err (!%p651_p5)
}
  0x2e   :  { %s689_s0 = smov 128   ;;  %s690_s29 = smov 8  }
  0x2f   :  { %73 = dma.hbm_to_vmem [thread:$0]  %s818_s8, 2048, %s68_s27, [#allocation9], %s689_s0, %s689_s0, %s690_s29  }
  0x30   :  { %675 = dma.done.wait [#allocation3], 16  }
  0x31   :  { %676 = vsyncadd [#allocation3], 4294967280 }
  0x32   :  { %677 = dma.done.wait [#allocation6], 1152  }
  0x33   :  { %678 = vsyncadd [#allocation6], 4294966144 }
  0x34   :  { %679 = dma.done.wait [#allocation9], 2048  }
  0x35   :  { %680 = vsyncadd [#allocation9], 4294965248  ;;  %v691_v0 = vmov 0.0   ;;  %vm692_vm0 = vmmov 0   ;;  %vm96_vm1 = vcmask 1042432   ;;  %v562_v3 = vld [vmem:[#allocation5] sm:$0xff]   ;;  %v320_v35 = vlaneseq }
  0x36   :  { %484 = vmatprep.subr.bf16.mxu0 %v691_v0  ;;  %490 = vmatprep.subr.bf16.mxu1 %v691_v0  ;;  %v91_v1 = vld [vmem:[%s813_s3] sm:$0x7]  ;;  %vm92_vm2 = vcmask 48128   ;;  %vm146_vm3 = vcmask 130048   ;;  %v565_v8 = vld [vmem:[#allocation7 + $0x28] sm:$0xff]   ;;  %v566_v9 = vld [vmem:[#allocation7 + $0x20] sm:$0xff]  }
  0x37   :  { %486 = vmatprep.mubr.msk.bf16.mxu0 %vm692_vm0, %v691_v0  ;;  %492 = vmatprep.mubr.msk.bf16.mxu1 %vm692_vm0, %v691_v0  ;;  %v98_v2 = vsel %vm96_vm1, %v91_v1, 0  ;;  %v90_v4 = vld [vmem:[%s811_s1] sm:$0x1]  ;;  %v563_v5 = vld [vmem:[#allocation7 + $0x38] sm:$0xff]   ;;  %v569_v12 = vld [vmem:[#allocation7 + $0x8] sm:$0xff]   ;;  %v321_v36 = vand.u32 127, %v320_v35 }
  0x38   :  { %485 = vmatpush3.bf16.msra.mxu0 %v98_v2  ;;  %491 = vmatpush3.bf16.msra.mxu1 %v562_v3  ;;  %v87_v6 = vld [vmem:[#allocation2] sm:$0x1]  ;;  %v567_v10 = vld [vmem:[#allocation7 + $0x18] sm:$0xff]   ;;  %v570_v13 = vld [vmem:[#allocation7] sm:$0xff]   ;;  %vm326_vm6 = vcmask 1041408  }
  0x39   :  { %496 = vmatprep.subr.bf16.mxu0 %v691_v0  ;;  %516 = vmatprep.subr.mxu1 %v691_v0  ;;  %v564_v7 = vld [vmem:[#allocation7 + $0x30] sm:$0xff]   ;;  %v349_v29 = vld [vmem:[#allocation8 + $0x78] sm:$0xff]  ;;  %v347_v31 = vld [vmem:[#allocation8 + $0x68] sm:$0xff]  ;;  %vm322_vm5 = vcmp.lt.s32.totalorder %v321_v36, 6 }
  0x3a   :  { %v568_v11 = vld [vmem:[#allocation7 + $0x10] sm:$0xff]   ;;  %v346_v32 = vld [vmem:[#allocation8 + $0x60] sm:$0xff]  ;;  %v345_v33 = vld [vmem:[#allocation8 + $0x58] sm:$0xff] }
  0x3b   :  { %487 = vmatmul.mubr.msk.bf16.vlgmr.msra.gmra.mxu0 %vm92_vm2, %v90_v4  ;;  %493 = vmatmul.mubr.msk.bf16.vlgmr.msra.gmra.mxu1 %vm146_vm3, %v87_v6  ;;  %v443_v16 = vld [vmem:[%s814_s4] ss:$0 sm:$0xff]  ;;  %v343_v45 = vld [vmem:[#allocation8 + $0x48] sm:$0xff]  ;;  %v342_v46 = vld [vmem:[#allocation8 + $0x40] sm:$0xff] }
  0x3c   :  { %497 = vmatpush3.bf16.msra.mxu0 %v563_v5  ;;  %512 = vmatprep.mubr.msk.bf16.mxu0 %vm692_vm0, %v691_v0  ;;  %v444_v19 = vld [vmem:[%s815_s5] ss:$0 sm:$0xff]  ;;  %v341_v47 = vld [vmem:[#allocation8 + $0x38] sm:$0xff]  ;;  %v339_v49 = vld [vmem:[#allocation8 + $0x28] sm:$0xff] }
  0x3d   :  { %498 = vmatprep.subr.bf16.mxu0 %v691_v0  ;;  %548 = vmatprep.mubr.msk.f32.mxu1 %vm692_vm0, %v691_v0  ;;  %v348_v30 = vld [vmem:[#allocation8 + $0x70] sm:$0xff]  ;;  %v338_v50 = vld [vmem:[#allocation8 + $0x20] sm:$0xff]  ;;  %v337_v51 = vld [vmem:[#allocation8 + $0x18] sm:$0xff] }
  0x3e   :  { %517 = vmatpush3.msra.mxu1 %v349_v29  ;;  %v344_v34 = vld [vmem:[#allocation8 + $0x50] sm:$0xff]  ;;  %v335_v53 = vld [vmem:[#allocation8 + $0x8] sm:$0xff]  ;;  %v334_v54 = vld [vmem:[#allocation8] sm:$0xff] }
  0x3f   :  { %518 = vmatprep.subr.mxu1 %v691_v0  ;;  %v445_v37 = vld [vmem:[%s817_s7] ss:$0 sm:$0xff]  ;;  %s693_s7 = smov [#allocation10]  }
  0x40   :  { %499 = vmatpush3.bf16.msra.mxu0 %v564_v7  ;;  %519 = vmatpush3.msra.mxu1 %v348_v30  ;;  %v340_v48 = vld [vmem:[#allocation8 + $0x30] sm:$0xff]  ;;  %s429_s15 = sshll.u32 %s693_s7, 4  ;;  %s430_s15 = int_to_ptr.vmem [resolvable:$true] %s429_s15 }
  0x41   :  { %500 = vmatprep.subr.bf16.mxu0 %v691_v0  ;;  %520 = vmatprep.subr.mxu1 %v691_v0  ;;  %v336_v52 = vld [vmem:[#allocation8 + $0x10] sm:$0xff]  ;;  %s655_s16 = scalar_lea.vmem %s430_s15, 32  ;;  %p660_p7 = scmp.lt.s32.totalorder %s430_s15, %s430_s15 }
  0x42   :  { %521 = vmatpush3.msra.mxu1 %v347_v31  ;;  %p656_p6 = scmp.ne.s32.totalorder %s430_s15, %s655_s16  ;;  %p661_p8 = scmp.lt.s32.totalorder %s655_s16, %s655_s16 }
  0x43   :  { %522 = vmatprep.subr.mxu1 %v691_v0 }
  0x44   :  { %501 = vmatpush3.bf16.msra.mxu0 %v565_v8  ;;  %523 = vmatpush3.msra.mxu1 %v346_v32  ;;  %p662_p9 = por %p661_p8, %p660_p7 }
  0x45   :  { %502 = vmatprep.subr.bf16.mxu0 %v691_v0  ;;  %524 = vmatprep.subr.mxu1 %v691_v0 }
  0x46   :  { %525 = vmatpush3.msra.mxu1 %v345_v33  ;;  %p663_p10 = pnand %p662_p9, %p656_p6 }
  0x47   :  { %526 = vmatprep.subr.mxu1 %v691_v0 }
  0x48   :  { %503 = vmatpush3.bf16.msra.mxu0 %v566_v9  ;;  %527 = vmatpush3.msra.mxu1 %v344_v34 }
  0x49   :  { %504 = vmatprep.subr.bf16.mxu0 %v691_v0  ;;  %528 = vmatprep.subr.mxu1 %v691_v0 }
  0x4a   :  { %529 = vmatpush3.msra.mxu1 %v343_v45 }
  0x4b   :  { %530 = vmatprep.subr.mxu1 %v691_v0 }
  0x4c   :  { %505 = vmatpush3.bf16.msra.mxu0 %v567_v10  ;;  %531 = vmatpush3.msra.mxu1 %v342_v46 }
  0x4d   :  { %506 = vmatprep.subr.bf16.mxu0 %v691_v0  ;;  %532 = vmatprep.subr.mxu1 %v691_v0 }
  0x4e   :  { %533 = vmatpush3.msra.mxu1 %v341_v47 }
  0x4f   :  { %534 = vmatprep.subr.mxu1 %v691_v0 }
  0x50   :  { %507 = vmatpush3.bf16.msra.mxu0 %v568_v11  ;;  %535 = vmatpush3.msra.mxu1 %v340_v48 }
  0x51   :  { %508 = vmatprep.subr.bf16.mxu0 %v691_v0  ;;  %536 = vmatprep.subr.mxu1 %v691_v0 }
  0x52   :  { %537 = vmatpush3.msra.mxu1 %v339_v49 }
  0x53   :  { %538 = vmatprep.subr.mxu1 %v691_v0 }
  0x54   :  { %509 = vmatpush3.bf16.msra.mxu0 %v569_v12  ;;  %539 = vmatpush3.msra.mxu1 %v338_v50 }
  0x55   :  { %510 = vmatprep.subr.bf16.mxu0 %v691_v0  ;;  %540 = vmatprep.subr.mxu1 %v691_v0 }
  0x56   :  { %541 = vmatpush3.msra.mxu1 %v337_v51 }
  0x57   :  { %542 = vmatprep.subr.mxu1 %v691_v0 }
  0x58   :  { %511 = vmatpush3.bf16.msra.mxu0 %v570_v13  ;;  %543 = vmatpush3.msra.mxu1 %v336_v52 }
  0x59   :  { %544 = vmatprep.subr.mxu1 %v691_v0 }
  0x5a   :  { %545 = vmatpush3.msra.mxu1 %v335_v53 }
  0x5b   :  { %546 = vmatprep.subr.mxu1 %v691_v0 }
  0x5c   :  { %547 = vmatpush3.msra.mxu1 %v334_v54 }
  0xfb   :  { %v134_v14 = vpop.f32.mrf.mxu0  ;;  %v184_v15 = vpop.f32.mrf.mxu1 }
  0xfc   :  { %v185_v17 = vadd.f32 %v184_v15, %v134_v14 }
  0xfd   :  { %v488_v18 = vpop.f32.mrf.mxu0  ;;  %v494_v20 = vpop.f32.mrf.mxu1 }
  0xfe   :  { %v197_v21 = vadd.f32 %v443_v16, %v185_v17 }
  0xff   :  { %v137_v22 = vpop.f32.mrf.mxu0  ;;  %v187_v23 = vpop.f32.mrf.mxu1 }
 0x100   :  { %vm198_vm4 = vcmp.gt.f32.partialorder %v197_v21, 0.0  ;;  %v206_v24 = vmul.f32 %v444_v19, %v197_v21 }
 0x101   :  { %v489_v25 = vpop.f32.mrf.mxu0  ;;  %v495_v26 = vpop.f32.mrf.mxu1 }
 0x102   :  { %v207_v27 = vsel %vm198_vm4, %v197_v21, %v206_v24 }
 0x103   :  { %v208_v28 = vpack.c.bf16 %v207_v27, %v207_v27 }
 0x105   :  { %513 = vmatmul.mubr.bf16.vlgmr.msra.gmra.mxu0 %v208_v28 }
 0x1c5   :  { %v314_v38 = vpop.f32.mrf.mxu0 }
 0x1c6   :  { %v315_v39 = vadd.f32 %v445_v37, %v314_v38 }
 0x1c7   :  { %v514_v40 = vpop.f32.mrf.mxu0 }
 0x1c8   :  { %v325_v41 = vsel %vm322_vm5, %v315_v39, -1e+30 }
 0x1c9   :  { %v317_v42 = vpop.f32.mrf.mxu0  ;;  %v327_v43 = vsel %vm326_vm6, %v325_v41, -inf }
 0x1ca   :  { %328 = vmax.xlane.f32.xlu0 %v327_v43 }
 0x1cb   :  { %v515_v44 = vpop.f32.mrf.mxu0 }
 0x253   :  { %v329_v55 = vpop.xlane.xlu0 %328 }
 0x254   :  { %v330_v56 = vsub.f32 %v315_v39, %v329_v55 }
 0x256   :  { %v331_v57 = vmul.f32 1.442695, %v330_v56 }
 0x258   :  { %571 = vpow2.f32 %v331_v57 }
 0x265   :  { %v572_v58 = vpop.eup %571 }
 0x266   :  { %v333_v59 = vsel %vm322_vm5, %v572_v58, 1.0 }
 0x267   :  { %549 = vmatmul.mubr.f32.vlgmr.msra.gmra.mxu1 %v333_v59 }
 0x327   :  { %v416_v60 = vpop.f32.mrf.mxu1 }
 0x328   :  { %573 = vrcp.f32 %v416_v60 }
 0x329   :  { %v550_v61 = vpop.f32.mrf.mxu1 }
 0x335   :  { %v574_v62 = vpop.eup %573 }
 0x336   :  { %v421_v63 = vmul.f32 %v574_v62, %v333_v59 }
 0x338   :  { %422 = vst [vmem:[#allocation10] sm:$0x3] %v421_v63 }
 0x339   :  { %666 = shalt.err (!%p663_p10)
}
 0x33a   :  { %432 = dma.vmem_to_hbm [thread:$0]  %s430_s15, 32, %s819_s9, [#allocation4]  }
 0x33b   :  { %681 = dma.done.wait [#allocation4], 32  }
 0x33c   :  { %682 = vsyncadd [#allocation4], 4294967264 }
 0x33d   :  { %436 = vsyncpa [#allocation3], 1 }
 0x33e   :  { %437 = vsyncpa [#allocation6], 1 }
 0x33f   :  { %438 = vsyncpa [#allocation9], 1 }
 0x340   :  { %439 = vsyncpa [#allocation4], 1 }

</bundles_post_ra>
